<compile_context>
chip_gen: v5e
topology: v5e:2x2
jax: 0.10.0
libtpu: 0.0.40
codegen_flags: <defaults>
</compile_context>

<pallas_src>
import functools

import jax
import jax.numpy as jnp
from jax.experimental import pallas as pl
from jax.experimental.pallas import tpu as pltpu


# ---------------------------------------------------------------------------
# Kernel
# ---------------------------------------------------------------------------
def _bahdanau_kernel(enc_ref, h2_ref, w1_ref, vw_ref, vb_ref,
                     ctx_ref, attn_ref, *, seq_len):
    bt, Lp, E = enc_ref.shape
    A = w1_ref.shape[1]

    enc = enc_ref[...]                                        # (bt, Lp, E) bf16

    # W1 projection: one fat (bt*Lp, E) @ (E, A) bf16 MXU matmul, f32 accum.
    # Lp is a multiple of 16, so both reshapes are metadata-only.
    h1 = jnp.dot(enc.reshape(bt * Lp, E), w1_ref[...],
                 preferred_element_type=jnp.float32)          # (bt*Lp, A)
    h1 = h1.reshape(bt, Lp, A)

    # Decoder projection (W2(dec)+b2+b1) was hoisted out; broadcast over L.
    score = jnp.tanh(h1 + h2_ref[...][:, None, :])            # (bt, Lp, A)

    # V reduction over attention_dim -> lane-dense (bt, Lp) energies.
    energy = jnp.sum(score * vw_ref[...], axis=-1) + vb_ref[0]

    # Mask padded sequence positions (padding only; semantics unchanged).
    if Lp != seq_len:
        lane = jax.lax.broadcasted_iota(jnp.int32, (bt, Lp), 1)
        energy = jnp.where(lane < seq_len, energy, -jnp.inf)

    # Softmax over L (lane axis); reciprocal goes to the otherwise-idle EUP.
    m = jnp.max(energy, axis=-1, keepdims=True)
    e = jnp.exp(energy - m)
    attn = e * pl.reciprocal(jnp.sum(e, axis=-1, keepdims=True), approx=True)

    # Context vector.  For modest L a VPU multiply + sublane reduce beats an
    # M=1 batched MXU matmul (the vector/XLU slots are idle after the W1
    # matmul); keep the MXU path only for large L.
    if Lp >= 256:
        ctx = jnp.einsum('bl,ble->be', attn.astype(enc.dtype), enc,
                         preferred_element_type=jnp.float32)  # (bt, E)
    else:
        ctx = jnp.sum(attn[:, :, None] * enc.astype(jnp.float32), axis=1)

    ctx_ref[...] = ctx                                        # (bt, E) dense
    attn_ref[...] = attn                                      # (bt, Lp) dense


# ---------------------------------------------------------------------------
# Sizing helpers
# ---------------------------------------------------------------------------
def _round_up(x, m):
    return ((x + m - 1) // m) * m


def _vmem_budget_bytes():
    """Generation-aware VMEM budget: ~half of physical capacity.

    128 MiB (v5e/v6e) -> 64 MiB budget; 64 MiB (v7x) -> 32 MiB budget.
    """
    cap = 64 * 1024 * 1024
    try:
        info = pltpu.get_tpu_info()
        cap = getattr(info, "vmem_capacity_bytes", cap) or cap
    except Exception:
        pass
    return int(min(cap // 2, 96 * 1024 * 1024))


def _choose_block_batch(B, L_pad, E, A, budget_bytes):
    """Pick bt (batch elements per grid step, multiple of 8) and a VMEM limit.

    Accounts for the double-buffered enc/h2 input streams, both dense output
    streams, the h1/score/context-product intermediates, and the resident
    W1/vw buffers.  Keeps ~8 grid steps for large B so both v7x TensorCores
    get several pipelined (prefetch-overlapped) steps each.
    """
    per_b = (2 * L_pad * E * 2          # enc block (bf16, double-buffered)
             + 2 * A * 4                # h2 block (f32, double-buffered)
             + 2 * E * 4                # ctx output (double-buffered)
             + 2 * L_pad * 4            # attn output (double-buffered)
             + 2 * L_pad * A * 4        # h1 + score intermediates (f32)
             + L_pad * E * 4            # attn*enc product before reduce (f32)
             + 8 * L_pad * 4)           # energy / exp / misc vregs
    fixed = 2 * (E * A * 2 + A * 4) + (2 << 20)   # W1/vw buffers + scratch headroom

    avail = budget_bytes - fixed
    if avail >= 8 * per_b:
        bt = max(8, (avail // per_b) // 8 * 8)
    else:
        bt = 8                                    # floor: raise the limit below

    # Keep >= ~8 grid steps when B is big enough (2 cores x pipeline depth x2).
    target_steps = 8
    bt = min(bt, max(8, _round_up(pl.cdiv(B, target_steps), 8)))
    bt = min(bt, _round_up(B, 8))

    vmem_limit = int(max(budget_bytes, fixed + bt * per_b + (2 << 20)))
    return int(bt), vmem_limit


# ---------------------------------------------------------------------------
# Wrapper
# ---------------------------------------------------------------------------
def bahdanau_attention(encoder_outputs, decoder_hidden, params):
    """encoder_outputs: (B, L, E) f32; decoder_hidden: (B, D) f32."""
    B, L, E = encoder_outputs.shape
    w1, b1, w2, b2, vw, vb = params
    A = w1.shape[1]

    # L padded to a multiple of 16 so the bf16 (bt, L, E)<->(bt*L, E) reshapes
    # stay metadata-only; B padded to a multiple of bt (dense 8-sublane blocks).
    L_pad = _round_up(L, 16)
    budget = _vmem_budget_bytes()
    bt, vmem_limit = _choose_block_batch(B, L_pad, E, A, budget)
    B_pad = pl.cdiv(B, bt) * bt
    grid = (B_pad // bt,)

    # Hoisted decoder projection (one batched XLA GEMM) with b1 folded in.
    h2 = decoder_hidden.astype(jnp.float32) @ w2 + b2 + b1          # (B, A)

    # bf16 HBM stream / MXU operands (f32 accumulation inside the kernel).
    enc = encoder_outputs.astype(jnp.bfloat16)
    w1_bf = w1.astype(jnp.bfloat16)

    if L_pad != L:
        enc = jnp.pad(enc, ((0, 0), (0, L_pad - L), (0, 0)))
    if B_pad != B:
        enc = jnp.pad(enc, ((0, B_pad - B), (0, 0), (0, 0)))
        h2 = jnp.pad(h2, ((0, B_pad - B), (0, 0)))

    vb_smem = vb.reshape(1)   # scalar V bias -> SMEM (scalar path)

    kernel = functools.partial(_bahdanau_kernel, seq_len=L)

    ctx, attn = pl.pallas_call(
        kernel,
        out_shape=(
            jax.ShapeDtypeStruct((B_pad, E), jnp.float32),
            jax.ShapeDtypeStruct((B_pad, L_pad), jnp.float32),
        ),
        grid=grid,
        in_specs=[
            pl.BlockSpec((bt, L_pad, E), lambda i: (i, 0, 0)),      # encoder bf16
            pl.BlockSpec((bt, A), lambda i: (i, 0)),                # h2 = W2 d + b2 + b1
            pl.BlockSpec((E, A), lambda i: (0, 0)),                 # W1 (VMEM-resident)
            pl.BlockSpec((1, A), lambda i: (0, 0)),                 # V weight (resident)
            pl.BlockSpec(memory_space=pltpu.MemorySpace.SMEM),      # V bias scalar
        ],
        out_specs=(
            pl.BlockSpec((bt, E), lambda i: (i, 0)),                # context (dense)
            pl.BlockSpec((bt, L_pad), lambda i: (i, 0)),            # attention (dense)
        ),
        compiler_params=pltpu.CompilerParams(
            dimension_semantics=("parallel",),
            vmem_limit_bytes=vmem_limit),
    )(enc, h2, w1_bf, vw, vb_smem)

    return ctx[:B], attn[:B, :L]


# ---------------------------------------------------------------------------
# Pure-JAX reference (f32)
# ---------------------------------------------------------------------------
def _reference(encoder_outputs, decoder_hidden, params):
    w1, b1, w2, b2, vw, vb = params
    h1 = encoder_outputs @ w1 + b1                                   # (B, L, A)
    h2 = (decoder_hidden @ w2 + b2)[:, None, :]                      # (B, 1, A)
    score = jnp.tanh(h1 + h2)                                        # (B, L, A)
    energy = jnp.sum(score * vw[None, :, :], axis=-1) + vb[0, 0]     # (B, L)
    attn = jax.nn.softmax(energy, axis=1)
    ctx = jnp.einsum('bl,ble->be', attn, encoder_outputs)
    return ctx, attn


if __name__ == "__main__":
    B, L = 2, 8
    E, D, A = 32, 16, 32   # encoder_hidden_dim, decoder_hidden_dim, attention_dim

    key = jax.random.PRNGKey(0)
    k_enc, k_dec, k_w1, k_b1, k_w2, k_b2, k_vw, k_vb = jax.random.split(key, 8)

    encoder_outputs = jax.random.normal(k_enc, (B, L, E), dtype=jnp.float32)
    decoder_hidden = jax.random.normal(k_dec, (B, D), dtype=jnp.float32)

    # Deterministic parameter init (Linear weights stored as (in, out)).
    w1 = jax.random.normal(k_w1, (E, A), dtype=jnp.float32) * 0.1
    b1 = jax.random.normal(k_b1, (1, A), dtype=jnp.float32) * 0.1
    w2 = jax.random.normal(k_w2, (D, A), dtype=jnp.float32) * 0.1
    b2 = jax.random.normal(k_b2, (1, A), dtype=jnp.float32) * 0.1
    vw = jax.random.normal(k_vw, (1, A), dtype=jnp.float32) * 0.1
    vb = jax.random.normal(k_vb, (1, 1), dtype=jnp.float32) * 0.1
    params = (w1, b1, w2, b2, vw, vb)

    ctx, attn = bahdanau_attention(encoder_outputs, decoder_hidden, params)
    jax.block_until_ready((ctx, attn))

    ctx_ref, attn_ref = _reference(encoder_outputs, decoder_hidden, params)
    assert ctx.shape == (B, E) and attn.shape == (B, L)
    # bf16 enc/W1 stream + approx reciprocal -> relaxed tolerances vs f32 ref.
    assert jnp.allclose(ctx, ctx_ref, atol=2e-2, rtol=2e-2), \
        float(jnp.max(jnp.abs(ctx - ctx_ref)))
    assert jnp.allclose(attn, attn_ref, atol=2e-2, rtol=2e-2), \
        float(jnp.max(jnp.abs(attn - attn_ref)))

    print("KERNEL_OK")
</pallas_src>

<mosaic_0001>
module attributes {stable_mosaic.version = 11 : i64} {
  func.func @_bahdanau_kernel(%arg0: i32, %arg1: memref<8x16x32xbf16, #tpu.memory_space<vmem>>, %arg2: memref<8x32xf32, #tpu.memory_space<vmem>>, %arg3: memref<32x32xbf16, #tpu.memory_space<vmem>>, %arg4: memref<1x32xf32, #tpu.memory_space<vmem>>, %arg5: memref<1xf32, #tpu.memory_space<smem>>, %arg6: memref<8x32xf32, #tpu.memory_space<vmem>>, %arg7: memref<8x16xf32, #tpu.memory_space<vmem>>) attributes {dimension_semantics = [#tpu.dimension_semantics<parallel>], iteration_bounds = array<i64: 1>, scalar_prefetch = 0 : i64, scratch_operands = 0 : i64, tpu.core_type = #tpu.core_type<tc>, window_params = [{transform_indices = @transform_0, window_bounds = array<i64: 8, 16, 32>}, {transform_indices = @transform_1, window_bounds = array<i64: 8, 32>}, {pipeline_mode = #tpu.pipeline_mode<synchronous>, transform_indices = @transform_2, window_bounds = array<i64: 32, 32>}, {pipeline_mode = #tpu.pipeline_mode<synchronous>, transform_indices = @transform_3, window_bounds = array<i64: 1, 32>}, {transform_indices = @transform_4, window_bounds = array<i64: 1>}, {transform_indices = @transform_5, window_bounds = array<i64: 8, 32>}, {transform_indices = @transform_6, window_bounds = array<i64: 8, 16>}]} {
    %c0 = arith.constant 0 : index
    %c0_0 = arith.constant 0 : index
    %c0_1 = arith.constant 0 : index
    %0 = vector.load %arg1[%c0, %c0_0, %c0_1] : memref<8x16x32xbf16, #tpu.memory_space<vmem>>, vector<8x16x32xbf16>
    %1 = vector.shape_cast %0 : vector<8x16x32xbf16> to vector<128x32xbf16>
    %c0_2 = arith.constant 0 : index
    %c0_3 = arith.constant 0 : index
    %2 = vector.load %arg3[%c0_2, %c0_3] : memref<32x32xbf16, #tpu.memory_space<vmem>>, vector<32x32xbf16>
    %cst = arith.constant dense<0.000000e+00> : vector<128x32xf32>
    %3 = tpu.matmul %1, %2, %cst {dimension_numbers = #tpu.dot_dimension_numbers<[1], [0], [0], [1], [0, 0, 1, 1], [], []>} : vector<128x32xbf16>, vector<32x32xbf16>, vector<128x32xf32> -> vector<128x32xf32>
    %4 = vector.shape_cast %3 : vector<128x32xf32> to vector<8x16x32xf32>
    %c0_4 = arith.constant 0 : index
    %c0_5 = arith.constant 0 : index
    %5 = vector.load %arg2[%c0_4, %c0_5] : memref<8x32xf32, #tpu.memory_space<vmem>>, vector<8x32xf32>
    %6 = vector.shape_cast %5 : vector<8x32xf32> to vector<8x1x32xf32>
    %7 = vector.broadcast %6 : vector<8x1x32xf32> to vector<8x16x32xf32>
    %8 = arith.addf %4, %7 : vector<8x16x32xf32>
    %9 = math.tanh %8 : vector<8x16x32xf32>
    %c0_6 = arith.constant 0 : index
    %c0_7 = arith.constant 0 : index
    %10 = vector.load %arg4[%c0_6, %c0_7] : memref<1x32xf32, #tpu.memory_space<vmem>>, vector<1x32xf32>
    %11 = vector.shape_cast %10 : vector<1x32xf32> to vector<1x1x32xf32>
    %12 = vector.broadcast %11 : vector<1x1x32xf32> to vector<8x16x32xf32>
    %13 = arith.mulf %9, %12 : vector<8x16x32xf32>
    %cst_8 = arith.constant dense<0.000000e+00> : vector<8x16xf32>
    %14 = vector.multi_reduction <add>, %13, %cst_8 [2] : vector<8x16x32xf32> to vector<8x16xf32>
    %c0_9 = arith.constant 0 : index
    %15 = memref.load %arg5[%c0_9] : memref<1xf32, #tpu.memory_space<smem>>
    %16 = vector.broadcast %15 : f32 to vector<8x16xf32>
    %17 = arith.addf %14, %16 : vector<8x16xf32>
    %18 = tpu.iota {dimensions = array<i32: 1>} : vector<8x16xi32>
    %c8_i32 = arith.constant 8 : i32
    %19 = vector.broadcast %c8_i32 : i32 to vector<8x16xi32>
    %20 = arith.cmpi slt, %18, %19 : vector<8x16xi32>
    %cst_10 = arith.constant 0xFF800000 : f32
    %21 = vector.broadcast %cst_10 : f32 to vector<8x16xf32>
    %22 = arith.select %20, %17, %21 : vector<8x16xi1>, vector<8x16xf32>
    %cst_11 = arith.constant dense<0xFF800000> : vector<8xf32>
    %23 = vector.multi_reduction <maximumf>, %22, %cst_11 [1] : vector<8x16xf32> to vector<8xf32>
    %24 = vector.shape_cast %23 : vector<8xf32> to vector<8x1xf32>
    %25 = vector.broadcast %24 : vector<8x1xf32> to vector<8x16xf32>
    %26 = arith.subf %22, %25 : vector<8x16xf32>
    %27 = math.exp %26 : vector<8x16xf32>
    %cst_12 = arith.constant dense<0.000000e+00> : vector<8xf32>
    %28 = vector.multi_reduction <add>, %27, %cst_12 [1] : vector<8x16xf32> to vector<8xf32>
    %29 = vector.shape_cast %28 : vector<8xf32> to vector<8x1xf32>
    %30 = tpu.reciprocal %29 {approx = true} : vector<8x1xf32> -> vector<8x1xf32>
    %31 = vector.broadcast %30 : vector<8x1xf32> to vector<8x16xf32>
    %32 = arith.mulf %27, %31 : vector<8x16xf32>
    %33 = vector.shape_cast %32 : vector<8x16xf32> to vector<8x16x1xf32>
    %34 = arith.extf %0 : vector<8x16x32xbf16> to vector<8x16x32xf32>
    %35 = vector.broadcast %33 : vector<8x16x1xf32> to vector<8x16x32xf32>
    %36 = arith.mulf %35, %34 : vector<8x16x32xf32>
    %cst_13 = arith.constant dense<0.000000e+00> : vector<8x32xf32>
    %37 = vector.multi_reduction <add>, %36, %cst_13 [1] : vector<8x16x32xf32> to vector<8x32xf32>
    %c0_14 = arith.constant 0 : index
    %c0_15 = arith.constant 0 : index
    %38 = vector.load %arg6[%c0_14, %c0_15] : memref<8x32xf32, #tpu.memory_space<vmem>>, vector<8x32xf32>
    tpu.vector_store %arg6[%c0_14, %c0_15], %37 {strides = array<i32>} : memref<8x32xf32, #tpu.memory_space<vmem>>, vector<8x32xf32>,
    %c0_16 = arith.constant 0 : index
    %c0_17 = arith.constant 0 : index
    %39 = vector.load %arg7[%c0_16, %c0_17] : memref<8x16xf32, #tpu.memory_space<vmem>>, vector<8x16xf32>
    tpu.vector_store %arg7[%c0_16, %c0_17], %32 {strides = array<i32>} : memref<8x16xf32, #tpu.memory_space<vmem>>, vector<8x16xf32>,
    return
  }
  func.func @transform_0(%arg0: i32) -> (i32, i32, i32) {
    %c0_i32 = arith.constant 0 : i32
    %c0_i32_0 = arith.constant 0 : i32
    %c0_i32_1 = arith.constant 0 : i32
    return %arg0, %c0_i32, %c0_i32_0 : i32, i32, i32
  }
  func.func @transform_1(%arg0: i32) -> (i32, i32) {
    %c0_i32 = arith.constant 0 : i32
    %c0_i32_0 = arith.constant 0 : i32
    return %arg0, %c0_i32 : i32, i32
  }
  func.func @transform_2(%arg0: i32) -> (i32, i32) {
    %c0_i32 = arith.constant 0 : i32
    %c0_i32_0 = arith.constant 0 : i32
    %c0_i32_1 = arith.constant 0 : i32
    return %c0_i32, %c0_i32_0 : i32, i32
  }
  func.func @transform_3(%arg0: i32) -> (i32, i32) {
    %c0_i32 = arith.constant 0 : i32
    %c0_i32_0 = arith.constant 0 : i32
    %c0_i32_1 = arith.constant 0 : i32
    return %c0_i32, %c0_i32_0 : i32, i32
  }
  func.func @transform_4(%arg0: i32) -> i32 {
    %c0_i32 = arith.constant 0 : i32
    %c0_i32_0 = arith.constant 0 : i32
    return %c0_i32 : i32
  }
  func.func @transform_5(%arg0: i32) -> (i32, i32) {
    %c0_i32 = arith.constant 0 : i32
    %c0_i32_0 = arith.constant 0 : i32
    return %arg0, %c0_i32 : i32, i32
  }
  func.func @transform_6(%arg0: i32) -> (i32, i32) {
    %c0_i32 = arith.constant 0 : i32
    %c0_i32_0 = arith.constant 0 : i32
    return %arg0, %c0_i32 : i32, i32
  }
}

</mosaic_0001>

<bundles_post_ra>
// kernel: tpu_custom_call.1
= control target key start
LH: loop header
LB: loop body
LE: loop exit
PB: predicated region body
PF: predicated region fallthrough
CT: control target
= control target key end

     0   :  { %13 = vsyncpa [#allocation4], 0  ;;  %s1119_s0 = inlined_call_operand.hbm [shape: bf16[8,16,32], index: 0, kind: input, shape index: {}]   ;;  %s1120_s1 = inlined_call_operand.hbm [shape: f32[8,32], index: 1, kind: input, shape index: {}]   ;;  %s1121_s2 = inlined_call_operand.hbm [shape: bf16[32,32], index: 2, kind: input, shape index: {}]   ;;  %s1122_s3 = inlined_call_operand.vmem [shape: f32[1,32], index: 3, kind: input, shape index: {}]   ;;  %s1123_s4 = inlined_call_operand.<no memory space> [shape: f32[1], index: 4, kind: input, shape index: {}]   ;;  %s1124_s5 = inlined_call_operand.hbm [shape: f32[8,32], index: 5, kind: output, shape index: {0}]   ;;  %s1125_s6 = inlined_call_operand.hbm [shape: f32[8,16], index: 6, kind: output, shape index: {1}]  }
   0x1   :  { %14 = vsyncpa [#allocation7], 0 }
   0x2   :  { %15 = vsyncpa [#allocation5], 0  ;;  %s35_s23 = sshll.u32 %s1120_s1, 4  ;;  %s36_s23 = int_to_ptr.hbm [resolvable:$true] %s35_s23 }
   0x3   :  { %16 = vsyncpa [#allocation11], 0  ;;  %s941_s24 = smov [#allocation6]   ;;  %s21_s28 = sshll.u32 %s1119_s0, 4  ;;  %s22_s28 = int_to_ptr.hbm [resolvable:$true] %s21_s28 }
   0x4   :  { %s37_s25 = sshll.u32 %s941_s24, 4  ;;  %s942_s29 = smov [#allocation3]   ;;  %s38_s25 = int_to_ptr.vmem [resolvable:$true] %s37_s25 }
   0x5   :  { %40 = dma.hbm_to_vmem [thread:$0]  %s36_s23, 128, %s38_s25, [#allocation7]  }
   0x6   :  { %s23_s30 = sshll.u32 %s942_s29, 4  ;;  %s943_s7 = smov 64   ;;  %s24_s30 = int_to_ptr.vmem [resolvable:$true] %s23_s30 }
   0x7   :  { %s944_s8 = smov 4   ;;  %s45_s1 = sshll.u32 %s1121_s2, 4  ;;  %s46_s1 = int_to_ptr.hbm [resolvable:$true] %s45_s1 }
   0x8   :  { %29 = dma.hbm_to_vmem [thread:$0]  %s22_s28, 1024, %s24_s30, [#allocation4], %s943_s7, %s943_s7, %s944_s8  }
   0x9   :  { %s945_s11 = smov [#allocation8]  }
   0xa   :  { %s47_s12 = sshll.u32 %s945_s11, 4  ;;  %s48_s12 = int_to_ptr.vmem [resolvable:$true] %s47_s12 }
   0xb   :  { %53 = dma.hbm_to_vmem [thread:$0]  %s46_s1, 256, %s48_s12, [#allocation7], %s943_s7, %s943_s7, %s944_s8  }
   0xc   :  { %933 = dma.done.wait [#allocation4], 1024  }
   0xd   :  { %934 = vsyncadd [#allocation4], 4294966272 }
   0xe   :  { %935 = dma.done.wait [#allocation7], 384  }
   0xf   :  { %936 = vsyncadd [#allocation7], 4294966912  ;;  %v750_v0 = vld [vmem:[#allocation8 + $0x8] sm:$0xff]  ;;  %v749_v1 = vld [vmem:[#allocation8] sm:$0xff]  ;;  %vm143_vm0 = vcmask 261120   ;;  %vm382_vm1 = vcmask 130112  }
  0x10   :  { %174 = vmatpush.bf16.msra.mxu0 %v750_v0  ;;  %751 = vmatpush.bf16.msra.mxu1 %v750_v0  ;;  %v741_v2 = vld [vmem:[#allocation3] sm:$0xff]  ;;  %v743_v3 = vld [vmem:[#allocation3 + $0x10] sm:$0xff]  ;;  %v742_v6 = vld [vmem:[#allocation3 + $0x8] sm:$0xff]  ;;  %vm405_vm2 = vcmask 1041409   ;;  %vm407_vm3 = vcmask 1042434   ;;  %vm409_vm4 = vcmask 1043459  }
  0x11   :  { %752 = vmatpush.bf16.msra.mxu2 %v750_v0  ;;  %753 = vmatpush.bf16.msra.mxu3 %v750_v0  ;;  %v745_v4 = vld [vmem:[#allocation3 + $0x20] sm:$0xff]  ;;  %v747_v5 = vld [vmem:[#allocation3 + $0x30] sm:$0xff]  ;;  %v744_v7 = vld [vmem:[#allocation3 + $0x18] sm:$0xff]  ;;  %vm411_vm5 = vcmask 1044484   ;;  %vm413_vm6 = vcmask 1045509   ;;  %vm415_vm7 = vcmask 1046534  }
  0x12   :  { %v746_v8 = vld [vmem:[#allocation3 + $0x28] sm:$0xff]  ;;  %v748_v9 = vld [vmem:[#allocation3 + $0x38] sm:$0xff]  ;;  %v1000_v10 = vld [vmem:[#allocation6] sm:$0xff]  ;;  %vm417_vm8 = vcmask 1047559   ;;  %vm421_vm10 = vcmask 130048   ;;  %s677_s15 = sshll.u32 %s1125_s6, 4  ;;  %s678_s15 = int_to_ptr.hbm [resolvable:$true] %s677_s15 }
  0x13   :  { %v220_v11 = vrot.slane %v1000_v10, 2  ;;  %v226_v12 = vperm.slane %v1000_v10, 0  ;;  %v222_v16 = vrot.slane %v1000_v10, 4  ;;  %v224_v17 = vrot.slane %v1000_v10, 6  ;;  %v1011_v22 = vld [vmem:[%s1122_s3] ss:$0 sm:$0xff] }
  0x14   :  { %175 = vmatpush.bf16.msra.mxu0 %v749_v1  ;;  %754 = vmatpush.bf16.msra.mxu1 %v749_v1  ;;  %v219_v30 = vrot.slane %v1000_v10, 1  ;;  %v223_v43 = vrot.slane %v1000_v10, 5  ;;  %v221_v47 = vrot.slane %v1000_v10, 3  ;;  %v225_v62 = vrot.slane %v1000_v10, 7  ;;  %s946_s16 = smov [#allocation10]   ;;  %s947_s6 = smov [#allocation9]  }
  0x15   :  { %755 = vmatpush.bf16.msra.mxu2 %v749_v1  ;;  %756 = vmatpush.bf16.msra.mxu3 %v749_v1  ;;  %v228_v13 = vperm.slane %v220_v11, 0  ;;  %v230_v20 = vperm.slane %v222_v16, 0  ;;  %v1006_v21 = vperm.slane %v224_v17, 0  ;;  %s675_s17 = sshll.u32 %s946_s16, 4  ;;  %s664_s18 = sshll.u32 %s947_s6, 4  ;;  %s676_s17 = int_to_ptr.vmem [resolvable:$true] %s675_s17  ;;  %s665_s18 = int_to_ptr.vmem [resolvable:$true] %s664_s18 }
  0x16   :  { %v227_v38 = vperm.slane %v219_v30, 0  ;;  %v231_v52 = vperm.slane %v223_v43, 0  ;;  %v229_v56 = vperm.slane %v221_v47, 0  ;;  %s666_s21 = sshll.u32 %s1124_s5, 4  ;;  %s667_s21 = int_to_ptr.hbm [resolvable:$true] %s666_s21 }
  0x17   :  { %733 = vmatmul.msk.bf16.vlgmr.msra.gmra.mxu0 %vm143_vm0, %v741_v2  ;;  %735 = vmatmul.msk.bf16.vlgmr.msra.gmra.mxu1 %vm143_vm0, %v743_v3 }
  0x18   :  { %737 = vmatmul.msk.bf16.vlgmr.msra.gmra.mxu2 %vm143_vm0, %v745_v4  ;;  %739 = vmatmul.msk.bf16.vlgmr.msra.gmra.mxu3 %vm143_vm0, %v747_v5 }
  0x27   :  { %734 = vmatmul.msk.bf16.gmra.mxu0 %vm143_vm0, %v742_v6  ;;  %736 = vmatmul.msk.bf16.gmra.mxu1 %vm143_vm0, %v744_v7  ;;  %v233_v6 = vperm.slane %v225_v62, 0 }
  0x28   :  { %738 = vmatmul.msk.bf16.gmra.mxu2 %vm143_vm0, %v746_v8  ;;  %740 = vmatmul.msk.bf16.gmra.mxu3 %vm143_vm0, %v748_v9 }
  0x94   :  { %v177_v14 = vpop.f32.mrf.mxu0  ;;  %v187_v15 = vpop.f32.mrf.mxu1 }
  0x95   :  { %v242_v18 = vadd.f32 %v226_v12, %v177_v14  ;;  %v246_v19 = vadd.f32 %v228_v13, %v187_v15 }
  0x97   :  { %777 = vtanh.f32 %v242_v18 }
  0x98   :  { %779 = vtanh.f32 %v246_v19 }
  0x9b   :  { %v197_v23 = vpop.f32.mrf.mxu2  ;;  %v207_v24 = vpop.f32.mrf.mxu3 }
  0x9c   :  { %v250_v25 = vadd.f32 %v230_v20, %v197_v23  ;;  %v179_v26 = vpop.f32.mrf.mxu0  ;;  %v254_v27 = vadd.f32 %v1006_v21, %v207_v24  ;;  %v189_v28 = vpop.f32.mrf.mxu1 }
  0x9d   :  { %v778_v29 = vpop.eup %777  ;;  %v247_v33 = vadd.f32 %v228_v13, %v189_v28  ;;  %v243_v35 = vadd.f32 %v226_v12, %v179_v26 }
  0x9e   :  { %v780_v31 = vpop.eup %779  ;;  %781 = vtanh.f32 %v250_v25  ;;  %v278_v32 = vmul.f32 %v778_v29, %v1011_v22 }
  0x9f   :  { %v282_v34 = vmul.f32 %v780_v31, %v1011_v22  ;;  %783 = vtanh.f32 %v254_v27 }
  0xa0   :  { %v294_v36 = vsel %vm143_vm0, %v278_v32, 0.0  ;;  %785 = vtanh.f32 %v247_v33 }
  0xa1   :  { %v306_v37 = vsel %vm143_vm0, %v282_v34, 0.0  ;;  %295 = vadd.xlane.f32.xlu0 %v294_v36  ;;  %787 = vtanh.f32 %v243_v35 }
  0xa2   :  { %307 = vadd.xlane.f32.xlu2 %v306_v37 }
  0xa3   :  { %v199_v39 = vpop.f32.mrf.mxu2  ;;  %v1019_v40 = vpop.f32.mrf.mxu3 }
  0xa4   :  { %v782_v41 = vpop.eup %781  ;;  %v182_v42 = vpop.f32.mrf.mxu0  ;;  %v251_v51 = vadd.f32 %v230_v20, %v199_v39  ;;  %v255_v30 = vadd.f32 %v1006_v21, %v1019_v40 }
  0xa5   :  { %v244_v44 = vadd.f32 %v227_v38, %v182_v42  ;;  %v286_v45 = vmul.f32 %v782_v41, %v1011_v22  ;;  %v784_v46 = vpop.eup %783  ;;  %v192_v55 = vpop.f32.mrf.mxu1 }
  0xa6   :  { %v290_v49 = vmul.f32 %v784_v46, %v1011_v22  ;;  %v786_v50 = vpop.eup %785  ;;  %v248_v1 = vadd.f32 %v229_v56, %v192_v55 }
  0xa7   :  { %789 = vtanh.f32 %v244_v44  ;;  %v318_v48 = vsel %vm143_vm0, %v286_v45, 0.0  ;;  %v788_v54 = vpop.eup %787  ;;  %v283_v58 = vmul.f32 %v786_v50, %v1011_v22 }
  0xa8   :  { %v330_v53 = vsel %vm143_vm0, %v290_v49, 0.0  ;;  %791 = vtanh.f32 %v251_v51  ;;  %v279_v0 = vmul.f32 %v788_v54, %v1011_v22  ;;  %v343_v54 = vstv %s1123_s4 }
  0xa9   :  { %331 = vadd.xlane.f32.xlu0 %v330_v53  ;;  %v309_v4 = vsel %vm143_vm0, %v283_v58, 0.0  ;;  %v360_v53 = vlaneseq }
  0xaa   :  { %319 = vadd.xlane.f32.xlu2 %v318_v48  ;;  %v297_v7 = vsel %vm143_vm0, %v279_v0, 0.0 }
  0xab   :  { %v202_v57 = vpop.f32.mrf.mxu2  ;;  %v212_v59 = vpop.f32.mrf.mxu3  ;;  %v1058_v55 = vand.u32 127, %v360_v53 }
  0xac   :  { %v252_v60 = vadd.f32 %v231_v52, %v202_v57  ;;  %v184_v61 = vpop.f32.mrf.mxu0  ;;  %v256_v14 = vadd.f32 %v233_v6, %v212_v59 }
  0xad   :  { %v790_v63 = vpop.eup %789  ;;  %v245_v3 = vadd.f32 %v227_v38, %v184_v61  ;;  %v194_v13 = vpop.f32.mrf.mxu1  ;;  %v380_v58 = vadd.s32 4294967288, %v1058_v55  ;;  %vm362_vm9 = vcmp.lt.s32.totalorder %v1058_v55, 8 }
  0xae   :  { %793 = vtanh.f32 %v252_v60  ;;  %v280_v2 = vmul.f32 %v790_v63, %v1011_v22  ;;  %v792_v8 = vpop.eup %791  ;;  %v249_v18 = vadd.f32 %v229_v56, %v194_v13 }
  0xaf   :  { %795 = vtanh.f32 %v248_v1  ;;  %v287_v15 = vmul.f32 %v792_v8, %v1011_v22 }
  0xb0   :  { %v300_v5 = vsel %vm143_vm0, %v280_v2, 0.0  ;;  %797 = vtanh.f32 %v245_v3 }
  0xb1   :  { %301 = vadd.xlane.f32.xlu1 %v300_v5  ;;  %298 = vadd.xlane.f32.xlu0 %v297_v7  ;;  %v321_v24 = vsel %vm143_vm0, %v287_v15, 0.0 }
  0xb2   :  { %310 = vadd.xlane.f32.xlu2 %v309_v4 }
  0xb3   :  { %v204_v9 = vpop.f32.mrf.mxu2  ;;  %v214_v10 = vpop.f32.mrf.mxu3 }
  0xb4   :  { %v794_v11 = vpop.eup %793  ;;  %v253_v12 = vadd.f32 %v231_v52, %v204_v9  ;;  %v257_v17 = vadd.f32 %v233_v6, %v214_v10 }
  0xb5   :  { %v288_v16 = vmul.f32 %v794_v11, %v1011_v22  ;;  %v796_v20 = vpop.eup %795 }
  0xb6   :  { %799 = vtanh.f32 %v253_v12  ;;  %v798_v23 = vpop.eup %797  ;;  %v284_v25 = vmul.f32 %v796_v20, %v1011_v22 }
  0xb7   :  { %v324_v19 = vsel %vm143_vm0, %v288_v16, 0.0  ;;  %801 = vtanh.f32 %v256_v14  ;;  %v281_v27 = vmul.f32 %v798_v23, %v1011_v22 }
  0xb8   :  { %803 = vtanh.f32 %v257_v17  ;;  %v312_v32 = vsel %vm143_vm0, %v284_v25, 0.0 }
  0xb9   :  { %325 = vadd.xlane.f32.xlu1 %v324_v19  ;;  %322 = vadd.xlane.f32.xlu0 %v321_v24  ;;  %805 = vtanh.f32 %v249_v18  ;;  %v303_v34 = vsel %vm143_vm0, %v281_v27, 0.0 }
  0xba   :  { %807 = vtanh.f32 %v255_v30 }
  0xbc   :  { %v800_v26 = vpop.eup %799 }
  0xbd   :  { %v289_v28 = vmul.f32 %v800_v26, %v1011_v22  ;;  %v802_v29 = vpop.eup %801 }
  0xbe   :  { %v804_v33 = vpop.eup %803  ;;  %v292_v36 = vmul.f32 %v802_v29, %v1011_v22 }
  0xbf   :  { %v327_v31 = vsel %vm143_vm0, %v289_v28, 0.0  ;;  %v806_v35 = vpop.eup %805  ;;  %v293_v37 = vmul.f32 %v804_v33, %v1011_v22 }
  0xc0   :  { %328 = vadd.xlane.f32.xlu2 %v327_v31  ;;  %v285_v38 = vmul.f32 %v806_v35, %v1011_v22  ;;  %v336_v21 = vsel %vm143_vm0, %v292_v36, 0.0  ;;  %v808_v41 = vpop.eup %807 }
  0xc1   :  { %304 = vadd.xlane.f32.xlu1 %v303_v34  ;;  %313 = vadd.xlane.f32.xlu0 %v312_v32  ;;  %v339_v39 = vsel %vm143_vm0, %v293_v37, 0.0  ;;  %v291_v42 = vmul.f32 %v808_v41, %v1011_v22 }
  0xc2   :  { %v315_v40 = vsel %vm143_vm0, %v285_v38, 0.0 }
  0xc3   :  { %v333_v43 = vsel %vm143_vm0, %v291_v42, 0.0 }
  0xc8   :  { %337 = vadd.xlane.f32.xlu2 %v336_v21 }
  0xc9   :  { %316 = vadd.xlane.f32.xlu1 %v315_v40  ;;  %340 = vadd.xlane.f32.xlu0 %v339_v39 }
  0xd1   :  { %334 = vadd.xlane.f32.xlu1 %v333_v43 }
 0x114   :  { %v296_v44 = vpop.xlane.xlu0 %295 }
 0x115   :  { %v308_v45 = vpop.xlane.xlu2 %307  ;;  %v344_v62 = vadd.f32 %v343_v54, %v296_v44 }
 0x116   :  { %v348_v0 = vadd.f32 %v343_v54, %v308_v45 }
 0x117   :  { %v379_v5 = vperm.slane %v344_v62, %v1058_v55 }
 0x118   :  { %v387_v8 = vperm.slane %v348_v0, %v1058_v55 }
 0x11c   :  { %v332_v46 = vpop.xlane.xlu0 %331 }
 0x11d   :  { %v320_v48 = vpop.xlane.xlu2 %319  ;;  %v356_v30 = vadd.f32 %v343_v54, %v332_v46 }
 0x11e   :  { %v352_v13 = vadd.f32 %v343_v54, %v320_v48 }
 0x11f   :  { %v399_v39 = vperm.slane %v356_v30, %v1058_v55 }
 0x120   :  { %v393_v29 = vperm.slane %v352_v13, %v1058_v55  ;;  %v76_v13 = vld [vmem:[#allocation3 + $0x14] sm:$0xff]  }
 0x124   :  { %v302_v47 = vpop.xlane.xlu1 %301  ;;  %v299_v49 = vpop.xlane.xlu0 %298 }
 0x125   :  { %v311_v52 = vpop.xlane.xlu2 %310  ;;  %v345_v59 = vadd.f32 %v343_v54, %v299_v49  ;;  %v346_v60 = vadd.f32 %v343_v54, %v302_v47 }
 0x126   :  { %v349_v1 = vadd.f32 %v343_v54, %v311_v52 }
 0x127   :  { %v381_v2 = vperm.slane %v345_v59, %v380_v58  ;;  %v384_v3 = vperm.slane %v346_v60, %v1058_v55 }
 0x128   :  { %v388_v9 = vperm.slane %v349_v1, %v380_v58 }
 0x129   :  { %v383_v12 = vsel %vm382_vm1, %v381_v2, %v379_v5 }
 0x12a   :  { %v389_v20 = vsel %vm382_vm1, %v388_v9, %v387_v8  ;;  %v72_v9 = vld [vmem:[#allocation3] sm:$0xff]  }
 0x12c   :  { %v326_v50 = vpop.xlane.xlu1 %325  ;;  %v323_v51 = vpop.xlane.xlu0 %322 }
 0x12d   :  { %v353_v10 = vadd.f32 %v343_v54, %v323_v51  ;;  %v354_v25 = vadd.f32 %v343_v54, %v326_v50 }
 0x12f   :  { %v394_v23 = vperm.slane %v353_v10, %v380_v58  ;;  %v396_v36 = vperm.slane %v354_v25, %v1058_v55  ;;  %v542_v25 = vunpack.c.l.bf16 %v76_v13 }
 0x131   :  { %v395_v34 = vsel %vm382_vm1, %v394_v23, %v393_v29  ;;  %v543_v23 = vunpack.c.h.bf16 %v76_v13 }
 0x133   :  { %v329_v61 = vpop.xlane.xlu2 %328 }
 0x134   :  { %v305_v22 = vpop.xlane.xlu1 %304  ;;  %v314_v56 = vpop.xlane.xlu0 %313  ;;  %v355_v19 = vadd.f32 %v343_v54, %v329_v61 }
 0x135   :  { %v347_v57 = vadd.f32 %v343_v54, %v305_v22  ;;  %v350_v4 = vadd.f32 %v343_v54, %v314_v56 }
 0x136   :  { %v397_v32 = vperm.slane %v355_v19, %v380_v58  ;;  %v79_v19 = vld [vmem:[#allocation3 + $0x20] sm:$0xff]  }
 0x137   :  { %v385_v63 = vperm.slane %v347_v57, %v380_v58  ;;  %v390_v14 = vperm.slane %v350_v4, %v1058_v55 }
 0x138   :  { %v398_v41 = vsel %vm382_vm1, %v397_v32, %v396_v36 }
 0x139   :  { %v386_v6 = vsel %vm382_vm1, %v385_v63, %v384_v3 }
 0x13a   :  { %v406_v15 = vsel %vm405_vm2, %v386_v6, %v383_v12  ;;  %v73_v12 = vld [vmem:[#allocation3 + $0x8] sm:$0xff]  }
 0x13b   :  { %v338_v17 = vpop.xlane.xlu2 %337  ;;  %v408_v26 = vsel %vm407_vm3, %v389_v20, %v406_v15  ;;  %v537_v15 = vunpack.c.l.bf16 %v72_v9 }
 0x13c   :  { %v317_v7 = vpop.xlane.xlu1 %316  ;;  %v341_v18 = vpop.xlane.xlu0 %340  ;;  %v358_v27 = vadd.f32 %v343_v54, %v338_v17  ;;  %v78_v17 = vld [vmem:[#allocation3 + $0x1c] sm:$0xf] }
 0x13d   :  { %v351_v11 = vadd.f32 %v343_v54, %v317_v7  ;;  %v359_v28 = vadd.f32 %v343_v54, %v341_v18  ;;  %v540_v18 = vunpack.c.h.bf16 %v73_v12  ;;  %v544_v29 = vunpack.c.l.bf16 %v78_v17 }
 0x13e   :  { %v402_v37 = vperm.slane %v358_v27, %v1058_v55  ;;  %v435_v55 = vshrl.u32 %v360_v53, 7 }
 0x13f   :  { %v391_v16 = vperm.slane %v351_v11, %v380_v58  ;;  %v403_v38 = vperm.slane %v359_v28, %v380_v58  ;;  %v75_v11 = vld [vmem:[#allocation3 + $0x10] sm:$0xf] }
 0x140   :  { %766 = vset.pattern.permute.xlu2 %v435_v55  ;;  %764 = vset.pattern.permute.xlu0 %v435_v55  ;;  %v442_v22 = vadd.s32 8, %v435_v55 }
 0x141   :  { %v392_v24 = vsel %vm382_vm1, %v391_v16, %v390_v14  ;;  %v404_v44 = vsel %vm382_vm1, %v403_v38, %v402_v37  ;;  %v538_v14 = vunpack.c.h.bf16 %v72_v9  ;;  %v541_v16 = vunpack.c.l.bf16 %v75_v11 }
 0x142   :  { %v410_v31 = vsel %vm409_vm4, %v392_v24, %v408_v26  ;;  %765 = vset.pattern.permute.xlu1 %v442_v22  ;;  %v539_v24 = vunpack.c.l.bf16 %v73_v12  ;;  %v546_v26 = vunpack.c.h.bf16 %v79_v19 }
 0x143   :  { %v412_v21 = vsel %vm411_vm5, %v395_v34, %v410_v31  ;;  %v545_v31 = vunpack.c.l.bf16 %v79_v19  ;;  %v86_v19 = vld [vmem:[#allocation3 + $0x38] sm:$0xff]  }
 0x144   :  { %v335_v33 = vpop.xlane.xlu1 %334  ;;  %v414_v43 = vsel %vm413_vm6, %v398_v41, %v412_v21 }
 0x145   :  { %v357_v35 = vadd.f32 %v343_v54, %v335_v33  ;;  %v81_v33 = vld [vmem:[#allocation3 + $0x28] sm:$0xff]  }
 0x147   :  { %v400_v40 = vperm.slane %v357_v35, %v380_v58 }
 0x149   :  { %v401_v42 = vsel %vm382_vm1, %v400_v40, %v399_v39 }
 0x14a   :  { %v416_v45 = vsel %vm415_vm7, %v401_v42, %v414_v43  ;;  %v547_v42 = vunpack.c.l.bf16 %v81_v33  ;;  %v83_v43 = vld [vmem:[#allocation3 + $0x30] sm:$0xff]  }
 0x14b   :  { %v418_v46 = vsel %vm417_vm8, %v404_v44, %v416_v45 }
 0x14c   :  { %v420_v47 = vsel %vm362_vm9, %v418_v46, -inf  ;;  %v550_v46 = vunpack.c.h.bf16 %v83_v43 }
 0x14d   :  { %v422_v48 = vsel %vm421_vm10, %v420_v47, -inf }
 0x14e   :  { %423 = vmax.xlane.f32.xlu1 %v422_v48 }
 0x1c1   :  { %v424_v49 = vpop.xlane.xlu1 %423 }
 0x1c2   :  { %v425_v50 = vsub.f32 %v420_v47, %v424_v49 }
 0x1c4   :  { %v426_v51 = vmul.f32 1.442695, %v425_v50  ;;  %v548_v50 = vunpack.c.h.bf16 %v81_v33 }
 0x1c6   :  { %809 = vpow2.f32 %v426_v51 }
 0x1cc   :  { %v810_v52 = vpop.eup %809 }
 0x1cd   :  { %v428_v54 = vsel %vm421_vm10, %v810_v52, 0.0 }
 0x1ce   :  { %429 = vadd.xlane.f32.xlu2 %v428_v54  ;;  %v549_v54 = vunpack.c.l.bf16 %v83_v43 }
 0x241   :  { %v430_v56 = vpop.xlane.xlu2 %429 }
 0x242   :  { %811 = vrcp.f32 %v430_v56 }
 0x248   :  { %v812_v57 = vpop.eup %811 }
 0x249   :  { %v432_v58 = vmul.f32 %v812_v57, %v810_v52 }
 0x24b   :  { %658 = vst.msk [vmem:[#allocation10] sm:$0xff] %vm421_vm10, %v432_v58  ;;  %v446_v59 = vperm.slane %v432_v58, 1  ;;  %v433_v60 = vperm.slane %v432_v58, 0  ;;  %v459_v61 = vperm.slane %v432_v58, 2  ;;  %v472_v53 = vperm.slane %v432_v58, 3 }
 0x24c   :  { %v511_v62 = vperm.slane %v432_v58, 6  ;;  %v485_v63 = vperm.slane %v432_v58, 4  ;;  %v498_v0 = vperm.slane %v432_v58, 5  ;;  %v524_v1 = vperm.slane %v432_v58, 7  ;;  %680 = dma.vmem_to_hbm [thread:$0]  %s676_s17, 128, %s678_s15, [#allocation11]  }
 0x24d   :  { %451 = vperm.xlu2 %766, %v446_v59   ;;  %444 = vperm.xlu1 %765, %v433_v60  }
 0x24e   :  { %438 = vperm.xlu0 %764, %v433_v60  }
 0x255   :  { %767 = vset.pattern.permute.xlu2 %v442_v22  ;;  %768 = vset.pattern.permute.xlu1 %v435_v55 }
 0x256   :  { %769 = vset.pattern.permute.xlu0 %v442_v22 }
 0x25d   :  { %457 = vperm.xlu2 %767, %v446_v59   ;;  %464 = vperm.xlu1 %768, %v459_v61  }
 0x25e   :  { %483 = vperm.xlu0 %769, %v472_v53  }
 0x265   :  { %470 = vperm.xlu2 %767, %v459_v61   ;;  %477 = vperm.xlu1 %768, %v472_v53  }
 0x266   :  { %772 = vset.pattern.permute.xlu0 %v435_v55 }
 0x26d   :  { %770 = vset.pattern.permute.xlu2 %v435_v55  ;;  %771 = vset.pattern.permute.xlu1 %v442_v22 }
 0x26e   :  { %516 = vperm.xlu0 %772, %v511_v62  }
 0x275   :  { %490 = vperm.xlu2 %770, %v485_v63   ;;  %496 = vperm.xlu1 %771, %v485_v63  }
 0x276   :  { %775 = vset.pattern.permute.xlu0 %v442_v22 }
 0x27d   :  { %503 = vperm.xlu2 %770, %v498_v0   ;;  %509 = vperm.xlu1 %771, %v498_v0  }
 0x285   :  { %773 = vset.pattern.permute.xlu2 %v442_v22  ;;  %774 = vset.pattern.permute.xlu1 %v435_v55 }
 0x28d   :  { %522 = vperm.xlu2 %773, %v511_v62   ;;  %529 = vperm.xlu1 %774, %v524_v1  }
 0x295   :  { %535 = vperm.xlu2 %773, %v524_v1  }
 0x2a7   :  { %v452_v2 = vpop.permute.xlu2 %451 }
 0x2a8   :  { %v555_v37 = vmul.f32 %v539_v24, %v452_v2 }
 0x2aa   :  { %v578_v22 = vsel %vm143_vm0, %v555_v37, 0.0 }
 0x2b7   :  { %v458_v3 = vpop.permute.xlu2 %457 }
 0x2b8   :  { %v556_v35 = vmul.f32 %v540_v18, %v458_v3 }
 0x2ba   :  { %v579_v47 = vsel %vm143_vm0, %v556_v35, 0.0 }
 0x2bb   :  { %v580_v60 = vadd.f32 %v579_v47, %v578_v22 }
 0x2bf   :  { %v445_v4 = vpop.permute.xlu1 %444  ;;  %v471_v5 = vpop.permute.xlu2 %470 }
 0x2c0   :  { %v439_v8 = vpop.permute.xlu0 %438  ;;  %v554_v27 = vmul.f32 %v538_v14, %v445_v4  ;;  %v558_v38 = vmul.f32 %v542_v25, %v471_v5 }
 0x2c1   :  { %v553_v28 = vmul.f32 %v537_v15, %v439_v8 }
 0x2c2   :  { %v570_v39 = vsel %vm143_vm0, %v554_v27, 0.0  ;;  %v588_v51 = vsel %vm143_vm0, %v558_v38, 0.0  ;;  %v552_v27 = vunpack.c.h.bf16 %v86_v19 }
 0x2c3   :  { %v569_v40 = vsel %vm143_vm0, %v553_v28, 0.0 }
 0x2c4   :  { %v571_v52 = vadd.f32 %v570_v39, %v569_v40 }
 0x2c6   :  { %v572_v2 = vrot.slane %v571_v52, 4 }
 0x2c8   :  { %v573_v12 = vadd.f32 %v572_v2, %v571_v52 }
 0x2cf   :  { %v465_v6 = vpop.permute.xlu1 %464  ;;  %v491_v7 = vpop.permute.xlu2 %490 }
 0x2d0   :  { %v484_v30 = vpop.permute.xlu0 %483  ;;  %v557_v32 = vmul.f32 %v541_v16, %v465_v6  ;;  %v561_v44 = vmul.f32 %v545_v31, %v491_v7  ;;  %v581_v7 = vrot.slane %v580_v60, 4 }
 0x2d1   :  { %v560_v41 = vmul.f32 %v544_v29, %v484_v30 }
 0x2d2   :  { %v587_v45 = vsel %vm143_vm0, %v557_v32, 0.0  ;;  %v605_v61 = vsel %vm143_vm0, %v561_v44, 0.0  ;;  %v582_v17 = vadd.f32 %v581_v7, %v580_v60  ;;  %v551_v32 = vunpack.c.l.bf16 %v86_v19 }
 0x2d3   :  { %v589_v56 = vadd.f32 %v588_v51, %v587_v45  ;;  %v597_v57 = vsel %vm143_vm0, %v560_v41, 0.0 }
 0x2d4   :  { %v583_v28 = vrot.slane %v582_v17, 2 }
 0x2d5   :  { %v590_v4 = vrot.slane %v589_v56, 4 }
 0x2d6   :  { %v584_v38 = vadd.f32 %v583_v28, %v582_v17 }
 0x2d7   :  { %v478_v10 = vpop.permute.xlu1 %477  ;;  %v504_v20 = vpop.permute.xlu2 %503  ;;  %v591_v15 = vadd.f32 %v590_v4, %v589_v56 }
 0x2d8   :  { %v559_v36 = vmul.f32 %v543_v23, %v478_v10  ;;  %v563_v58 = vmul.f32 %v547_v42, %v504_v20  ;;  %v574_v23 = vrot.slane %v573_v12, 2 }
 0x2d9   :  { %v592_v25 = vrot.slane %v591_v15, 2 }
 0x2da   :  { %v596_v48 = vsel %vm143_vm0, %v559_v36, 0.0  ;;  %v614_v5 = vsel %vm143_vm0, %v563_v58, 0.0  ;;  %v575_v33 = vadd.f32 %v574_v23, %v573_v12 }
 0x2db   :  { %v598_v53 = vadd.f32 %v597_v57, %v596_v48  ;;  %v593_v35 = vadd.f32 %v592_v25, %v591_v15  ;;  %v585_v48 = vrot.slane %v584_v38, 1 }
 0x2dc   :  { %v576_v42 = vrot.slane %v575_v33, 1 }
 0x2dd   :  { %v599_v8 = vrot.slane %v598_v53, 4  ;;  %v594_v44 = vrot.slane %v593_v35, 1  ;;  %v586_v57 = vadd.f32 %v585_v48, %v584_v38 }
 0x2de   :  { %v577_v52 = vadd.f32 %v576_v42, %v575_v33 }
 0x2df   :  { %v600_v18 = vadd.f32 %v599_v8, %v598_v53  ;;  %v595_v22 = vadd.f32 %v594_v44, %v593_v35 }
 0x2e0   :  { %v517_v59 = vpop.permute.xlu0 %516 }
 0x2e1   :  { %v565_v3 = vmul.f32 %v549_v54, %v517_v59  ;;  %v601_v29 = vrot.slane %v600_v18, 2 }
 0x2e3   :  { %v623_v13 = vsel %vm143_vm0, %v565_v3, 0.0 }
 0x2e7   :  { %v497_v34 = vpop.permute.xlu1 %496  ;;  %v523_v49 = vpop.permute.xlu2 %522 }
 0x2e8   :  { %v562_v21 = vmul.f32 %v546_v26, %v497_v34  ;;  %v566_v62 = vmul.f32 %v550_v46, %v523_v49 }
 0x2ea   :  { %v606_v55 = vsel %vm143_vm0, %v562_v21, 0.0  ;;  %v624_v9 = vsel %vm143_vm0, %v566_v62, 0.0  ;;  %v602_v21 = vadd.f32 %v601_v29, %v600_v18 }
 0x2eb   :  { %v607_v0 = vadd.f32 %v606_v55, %v605_v61  ;;  %v625_v16 = vadd.f32 %v624_v9, %v623_v13  ;;  %v649_v61 = vsel %vm405_vm2, %v586_v57, %v577_v52 }
 0x2ec   :  { %v603_v49 = vrot.slane %v602_v21, 1 }
 0x2ed   :  { %v608_v11 = vrot.slane %v607_v0, 4  ;;  %v626_v26 = vrot.slane %v625_v16, 4 }
 0x2ee   :  { %v604_v58 = vadd.f32 %v603_v49, %v602_v21 }
 0x2ef   :  { %v510_v63 = vpop.permute.xlu1 %509  ;;  %v609_v20 = vadd.f32 %v608_v11, %v607_v0  ;;  %v536_v30 = vpop.permute.xlu2 %535  ;;  %v627_v36 = vadd.f32 %v626_v26, %v625_v16 }
 0x2f0   :  { %v564_v1 = vmul.f32 %v548_v50, %v510_v63  ;;  %v568_v37 = vmul.f32 %v552_v27, %v536_v30  ;;  %v650_v63 = vsel %vm407_vm3, %v595_v22, %v649_v61 }
 0x2f1   :  { %v610_v31 = vrot.slane %v609_v20, 2  ;;  %v628_v45 = vrot.slane %v627_v36, 2 }
 0x2f2   :  { %v615_v6 = vsel %vm143_vm0, %v564_v1, 0.0  ;;  %v633_v46 = vsel %vm143_vm0, %v568_v37, 0.0  ;;  %v651_v1 = vsel %vm409_vm4, %v604_v58, %v650_v63 }
 0x2f3   :  { %v616_v10 = vadd.f32 %v615_v6, %v614_v5  ;;  %v611_v40 = vadd.f32 %v610_v31, %v609_v20  ;;  %v629_v56 = vadd.f32 %v628_v45, %v627_v36 }
 0x2f5   :  { %v617_v14 = vrot.slane %v616_v10, 4  ;;  %v612_v51 = vrot.slane %v611_v40, 1  ;;  %v630_v0 = vrot.slane %v629_v56, 1 }
 0x2f7   :  { %v618_v24 = vadd.f32 %v617_v14, %v616_v10  ;;  %v613_v60 = vadd.f32 %v612_v51, %v611_v40  ;;  %v631_v6 = vadd.f32 %v630_v0, %v629_v56 }
 0x2f9   :  { %v619_v34 = vrot.slane %v618_v24, 2  ;;  %v652_v3 = vsel %vm411_vm5, %v613_v60, %v651_v1 }
 0x2fb   :  { %v620_v43 = vadd.f32 %v619_v34, %v618_v24 }
 0x2fd   :  { %v621_v54 = vrot.slane %v620_v43, 1 }
 0x2ff   :  { %v530_v39 = vpop.permute.xlu1 %529  ;;  %v622_v53 = vadd.f32 %v621_v54, %v620_v43 }
 0x300   :  { %v567_v41 = vmul.f32 %v551_v32, %v530_v39 }
 0x301   :  { %v653_v5 = vsel %vm413_vm6, %v622_v53, %v652_v3 }
 0x302   :  { %v632_v47 = vsel %vm143_vm0, %v567_v41, 0.0  ;;  %v654_v8 = vsel %vm415_vm7, %v631_v6, %v653_v5 }
 0x303   :  { %v634_v50 = vadd.f32 %v633_v46, %v632_v47 }
 0x305   :  { %v635_v55 = vrot.slane %v634_v50, 4 }
 0x307   :  { %v636_v59 = vadd.f32 %v635_v55, %v634_v50 }
 0x309   :  { %v637_v62 = vrot.slane %v636_v59, 2 }
 0x30b   :  { %v638_v2 = vadd.f32 %v637_v62, %v636_v59 }
 0x30d   :  { %v639_v4 = vrot.slane %v638_v2, 1 }
 0x30f   :  { %v640_v7 = vadd.f32 %v639_v4, %v638_v2 }
 0x311   :  { %v655_v9 = vsel %vm417_vm8, %v640_v7, %v654_v8 }
 0x312   :  { %657 = vst.msk [vmem:[#allocation9] sm:$0xff] %vm143_vm0, %v655_v9 }
 0x313   :  { %669 = dma.vmem_to_hbm [thread:$0]  %s665_s18, 128, %s667_s21, [#allocation5]  }
 0x314   :  { %937 = dma.done.wait [#allocation5], 128  }
 0x315   :  { %938 = vsyncadd [#allocation5], 4294967168 }
 0x316   :  { %939 = dma.done.wait [#allocation11], 128  }
 0x317   :  { %940 = vsyncadd [#allocation11], 4294967168 }
 0x318   :  { %689 = vsyncpa [#allocation4], 1 }
 0x319   :  { %690 = vsyncpa [#allocation7], 1 }
 0x31a   :  { %691 = vsyncpa [#allocation5], 1 }
 0x31b   :  { %692 = vsyncpa [#allocation11], 1 }

</bundles_post_ra>
